<compile_context>
chip_gen: v6e
topology: v6e:2x2x1
jax: 0.10.0
libtpu: 0.0.40
codegen_flags: <defaults>
</compile_context>

<pallas_src>
import jax
import jax.numpy as jnp
from jax.experimental import pallas as pl
from jax.experimental.pallas import tpu as pltpu


# ----------------------------------------------------------------------------- TS fuzzy constants
# sub_systems_mat [2, 9], sub_systems_bias [9]  (non-trainable parameters of TSFuzzyLayer)
_SUB_MAT = (
    (-0.2, -0.1, -0.05, -0.05, -0.05, -0.01, -0.055, -0.01, 0.0),
    (0.0, -0.002, -0.001, -0.001, -0.001, -0.0002, 0.0008, -0.0002, 0.0),
)
_SUB_BIAS = (1.0, 0.7, 0.275, 0.4, 0.25, 0.07, 0.2225, 0.07, 0.0)
# gaussmf centers / sigmas:  x1 in {0,2,4}, sigma 0.75 ;  x2 in {0,90,180}, sigma 30
_M1, _NEG_INV_2S1SQ = (0.0, 2.0, 4.0), -1.0 / (2.0 * 0.75 * 0.75)
_M2, _NEG_INV_2S2SQ = (0.0, 90.0, 180.0), -1.0 / (2.0 * 30.0 * 30.0)

_LANES = 128
_EPS = 1e-12


# ----------------------------------------------------------------------------- Pallas kernel
def _memberships(x, means, neg_inv_2sig2):
    levels = []
    for m in means:
        d = x if m == 0.0 else x - m          # trace-time elision of the (x - 0) subtraction
        levels.append(jnp.exp((d * d) * neg_inv_2sig2))
    return levels


def attention_kernel(x1_ref, x2_ref, prio_ref, att_ref):
    """Fused TS-fuzzy attention over one lane-dense (row_block, 128) tile."""
    x1 = x1_ref[...]
    x2 = x2_ref[...]

    # gaussian membership levels (small / medium / large) for both antecedents — 6 EUP exps
    lv1 = _memberships(x1, _M1, _NEG_INV_2S1SQ)
    lv2 = _memberships(x2, _M2, _NEG_INV_2S2SQ)

    num = None
    den = None
    for i in range(3):            # rule order matches th.stack in ante_process: (i over x1, j over x2)
        for j in range(3):
            r = 3 * i + j
            truth = jnp.minimum(lv1[i], lv2[j])
            den = truth if den is None else den + truth
            a, b, c = _SUB_MAT[0][r], _SUB_MAT[1][r], _SUB_BIAS[r]
            if a == 0.0 and b == 0.0 and c == 0.0:
                continue          # rule 8: consequence is identically zero -> no num contribution
            cons = None
            if a != 0.0:
                cons = x1 * a
            if b != 0.0:          # rule 0 has b == 0 -> x2 term dropped at trace time
                t = x2 * b
                cons = t if cons is None else cons + t
            if c != 0.0:
                cons = jnp.full_like(x1, c) if cons is None else cons + c
            contrib = truth * cons
            num = contrib if num is None else num + contrib

    # truth-weighted consequence; eps guards den underflow, reciprocal goes to the EUP slot
    att = num * pl.reciprocal(den + _EPS, approx=True)

    # priority override: edges with etype in {0, 4} get attention = 1.0
    prio = prio_ref[...].astype(jnp.int32)
    att_ref[...] = jnp.where(prio != 0, jnp.float32(1.0), att)


# ----------------------------------------------------------------------------- wrapper (lane-dense tiling)
def fuzzy_attention(x1, x2, prio_edge, *, row_block=1024):
    """x1, x2: [E, T] antecedents; prio_edge: [E] priority mask.  Returns attention [E, T, 1]."""
    E, T = x1.shape
    n = E * T

    rows = -(-n // _LANES)                                    # cdiv(E*T, 128) row-vregs
    rows8 = ((rows + 7) // 8) * 8
    # >= 2 blocks whenever there is enough work, so v7x's two TensorCores both get a share.
    nblocks = max(2, -(-rows8 // row_block)) if rows8 >= 16 else 1
    if nblocks == 1:
        blk = rows                                            # single block == full array dims (legal)
    else:
        blk = ((-(-rows8 // nblocks) + 7) // 8) * 8           # multiple of 8 sublanes per block
    rows_p = blk * nblocks
    pad = rows_p * _LANES - n

    def _to_plane(a, dtype):                                  # flatten -> (maybe pad) -> (rows_p, 128)
        a = a.astype(dtype).reshape(-1)
        if pad:
            a = jnp.pad(a, (0, pad))
        return a.reshape(rows_p, _LANES)

    x1f = _to_plane(x1, jnp.float32)
    x2f = _to_plane(x2, jnp.float32)
    pf = _to_plane(jnp.broadcast_to(prio_edge.astype(jnp.int8)[:, None], (E, T)), jnp.int8)

    spec = pl.BlockSpec((blk, _LANES), lambda i: (i, 0))
    out = pl.pallas_call(
        attention_kernel,
        out_shape=jax.ShapeDtypeStruct((rows_p, _LANES), jnp.float32),
        grid=(nblocks,),
        in_specs=[spec, spec, spec],
        out_specs=spec,
        compiler_params=pltpu.CompilerParams(dimension_semantics=("parallel",)),
    )(x1f, x2f, pf)

    flat = out.reshape(-1)
    if pad:
        flat = flat[:n]
    return flat.reshape(E, T, 1)                              # unsqueeze(2) like the torch code


# ----------------------------------------------------------------------------- glue
def ante_generator(vec):
    # TODO(synk): Ante_generator is external/undefined in the fam_gnn repo; synthesized here as
    # (planar distance, |angle| in degrees) from the first two feature dims, consistent with the
    # gaussian rule centers (_M1 distances, _M2 angles).
    # TODO(synk): could be fused into the kernel by streaming vx/vy planes (sqrt/atan on the idle
    # EUP slot); kept in XLA because atan2 lowering support in Mosaic is not guaranteed.
    vx, vy = vec[..., 0], vec[..., 1]
    dist = jnp.sqrt(vx * vx + vy * vy)
    ang = jnp.abs(jnp.arctan2(vy, vx)) * (180.0 / jnp.pi)
    return dist, ang


def ts_fuzzy_layer_forward(feat, src, dst, etypes):
    """TSFuzzyLayer.forward: feat [N, T, F], src/dst/etypes [E] -> attention [E, T, 1]."""
    vec = feat[dst] - feat[src]                               # edges.dst['h'] - edges.src['h']
    x1, x2 = ante_generator(vec)                              # [E, T] each
    prio_edge = jnp.logical_or(etypes == 0, etypes == 4)      # self.priority edge set
    return fuzzy_attention(x1, x2, prio_edge)


# ----------------------------------------------------------------------------- pure-JAX reference
def ts_fuzzy_layer_ref(feat, src, dst, etypes):
    vec = feat[dst] - feat[src]
    x1, x2 = ante_generator(vec)
    lv1 = jnp.stack([jnp.exp(((x1 - m) ** 2) * _NEG_INV_2S1SQ) for m in _M1], axis=-1)   # [E,T,3]
    lv2 = jnp.stack([jnp.exp(((x2 - m) ** 2) * _NEG_INV_2S2SQ) for m in _M2], axis=-1)   # [E,T,3]
    truth = jnp.minimum(lv1[..., :, None], lv2[..., None, :]).reshape(*x1.shape, 9)      # [E,T,9]
    mat = jnp.asarray(_SUB_MAT, jnp.float32)                                             # [2,9]
    bias = jnp.asarray(_SUB_BIAS, jnp.float32)                                           # [9]
    cons = x1[..., None] * mat[0] + x2[..., None] * mat[1] + bias                        # [E,T,9]
    att = jnp.sum(truth * cons, axis=-1) / (jnp.sum(truth, axis=-1) + _EPS)
    prio = jnp.logical_or(etypes == 0, etypes == 4)[:, None]
    att = jnp.where(prio, 1.0, att)
    return att[..., None]


# ----------------------------------------------------------------------------- main
if __name__ == "__main__":
    def run_case(N, T, F, E, num_rels, key):
        kf, ks, kd, ke = jax.random.split(key, 4)
        feat = jax.random.normal(kf, (N, T, F), jnp.float32)
        src = jax.random.randint(ks, (E,), 0, N)
        dst = jax.random.randint(kd, (E,), 0, N)
        etypes = jax.random.randint(ke, (E,), 0, num_rels)

        out = jax.block_until_ready(ts_fuzzy_layer_forward(feat, src, dst, etypes))
        ref = ts_fuzzy_layer_ref(feat, src, dst, etypes)

        assert out.shape == (E, T, 1), out.shape
        assert bool(jnp.all(jnp.isfinite(out)))
        err = float(jnp.max(jnp.abs(out - ref)))
        assert bool(jnp.allclose(out, ref, rtol=1e-2, atol=1e-2)), err

    k1, k2 = jax.random.split(jax.random.PRNGKey(0))
    run_case(N=16, T=8, F=8, E=64, num_rels=5, key=k1)      # tiny: single-block, no pad/slice
    run_case(N=32, T=8, F=8, E=1000, num_rels=5, key=k2)    # multi-block parallel grid + padded tail
    print("KERNEL_OK")
</pallas_src>

<mosaic_0001>
module attributes {stable_mosaic.version = 11 : i64} {
  func.func @attention_kernel(%arg0: i32, %arg1: memref<4x128xf32, #tpu.memory_space<vmem>>, %arg2: memref<4x128xf32, #tpu.memory_space<vmem>>, %arg3: memref<4x128xi8, #tpu.memory_space<vmem>>, %arg4: memref<4x128xf32, #tpu.memory_space<vmem>>) attributes {dimension_semantics = [#tpu.dimension_semantics<parallel>], iteration_bounds = array<i64: 1>, scalar_prefetch = 0 : i64, scratch_operands = 0 : i64, tpu.core_type = #tpu.core_type<tc>, window_params = [{transform_indices = @transform_0, window_bounds = array<i64: 4, 128>}, {transform_indices = @transform_1, window_bounds = array<i64: 4, 128>}, {transform_indices = @transform_2, window_bounds = array<i64: 4, 128>}, {transform_indices = @transform_3, window_bounds = array<i64: 4, 128>}]} {
    %c0 = arith.constant 0 : index
    %c0_0 = arith.constant 0 : index
    %0 = vector.load %arg1[%c0, %c0_0] : memref<4x128xf32, #tpu.memory_space<vmem>>, vector<4x128xf32>
    %c0_1 = arith.constant 0 : index
    %c0_2 = arith.constant 0 : index
    %1 = vector.load %arg2[%c0_1, %c0_2] : memref<4x128xf32, #tpu.memory_space<vmem>>, vector<4x128xf32>
    %2 = arith.mulf %0, %0 : vector<4x128xf32>
    %cst = arith.constant -0.888888895 : f32
    %3 = vector.broadcast %cst : f32 to vector<4x128xf32>
    %4 = arith.mulf %2, %3 : vector<4x128xf32>
    %5 = math.exp %4 : vector<4x128xf32>
    %cst_3 = arith.constant 2.000000e+00 : f32
    %6 = vector.broadcast %cst_3 : f32 to vector<4x128xf32>
    %7 = arith.subf %0, %6 : vector<4x128xf32>
    %8 = arith.mulf %7, %7 : vector<4x128xf32>
    %cst_4 = arith.constant -0.888888895 : f32
    %9 = vector.broadcast %cst_4 : f32 to vector<4x128xf32>
    %10 = arith.mulf %8, %9 : vector<4x128xf32>
    %11 = math.exp %10 : vector<4x128xf32>
    %cst_5 = arith.constant 4.000000e+00 : f32
    %12 = vector.broadcast %cst_5 : f32 to vector<4x128xf32>
    %13 = arith.subf %0, %12 : vector<4x128xf32>
    %14 = arith.mulf %13, %13 : vector<4x128xf32>
    %cst_6 = arith.constant -0.888888895 : f32
    %15 = vector.broadcast %cst_6 : f32 to vector<4x128xf32>
    %16 = arith.mulf %14, %15 : vector<4x128xf32>
    %17 = math.exp %16 : vector<4x128xf32>
    %18 = arith.mulf %1, %1 : vector<4x128xf32>
    %cst_7 = arith.constant -5.55555569E-4 : f32
    %19 = vector.broadcast %cst_7 : f32 to vector<4x128xf32>
    %20 = arith.mulf %18, %19 : vector<4x128xf32>
    %21 = math.exp %20 : vector<4x128xf32>
    %cst_8 = arith.constant 9.000000e+01 : f32
    %22 = vector.broadcast %cst_8 : f32 to vector<4x128xf32>
    %23 = arith.subf %1, %22 : vector<4x128xf32>
    %24 = arith.mulf %23, %23 : vector<4x128xf32>
    %cst_9 = arith.constant -5.55555569E-4 : f32
    %25 = vector.broadcast %cst_9 : f32 to vector<4x128xf32>
    %26 = arith.mulf %24, %25 : vector<4x128xf32>
    %27 = math.exp %26 : vector<4x128xf32>
    %cst_10 = arith.constant 1.800000e+02 : f32
    %28 = vector.broadcast %cst_10 : f32 to vector<4x128xf32>
    %29 = arith.subf %1, %28 : vector<4x128xf32>
    %30 = arith.mulf %29, %29 : vector<4x128xf32>
    %cst_11 = arith.constant -5.55555569E-4 : f32
    %31 = vector.broadcast %cst_11 : f32 to vector<4x128xf32>
    %32 = arith.mulf %30, %31 : vector<4x128xf32>
    %33 = math.exp %32 : vector<4x128xf32>
    %34 = arith.minimumf %5, %21 : vector<4x128xf32>
    %cst_12 = arith.constant -2.000000e-01 : f32
    %35 = vector.broadcast %cst_12 : f32 to vector<4x128xf32>
    %36 = arith.mulf %0, %35 : vector<4x128xf32>
    %cst_13 = arith.constant 1.000000e+00 : f32
    %37 = vector.broadcast %cst_13 : f32 to vector<4x128xf32>
    %38 = arith.addf %36, %37 : vector<4x128xf32>
    %39 = arith.mulf %34, %38 : vector<4x128xf32>
    %40 = arith.minimumf %5, %27 : vector<4x128xf32>
    %41 = arith.addf %34, %40 : vector<4x128xf32>
    %cst_14 = arith.constant -1.000000e-01 : f32
    %42 = vector.broadcast %cst_14 : f32 to vector<4x128xf32>
    %43 = arith.mulf %0, %42 : vector<4x128xf32>
    %cst_15 = arith.constant -2.000000e-03 : f32
    %44 = vector.broadcast %cst_15 : f32 to vector<4x128xf32>
    %45 = arith.mulf %1, %44 : vector<4x128xf32>
    %46 = arith.addf %43, %45 : vector<4x128xf32>
    %cst_16 = arith.constant 0.699999988 : f32
    %47 = vector.broadcast %cst_16 : f32 to vector<4x128xf32>
    %48 = arith.addf %46, %47 : vector<4x128xf32>
    %49 = arith.mulf %40, %48 : vector<4x128xf32>
    %50 = arith.addf %39, %49 : vector<4x128xf32>
    %51 = arith.minimumf %5, %33 : vector<4x128xf32>
    %52 = arith.addf %41, %51 : vector<4x128xf32>
    %cst_17 = arith.constant -5.000000e-02 : f32
    %53 = vector.broadcast %cst_17 : f32 to vector<4x128xf32>
    %54 = arith.mulf %0, %53 : vector<4x128xf32>
    %cst_18 = arith.constant -1.000000e-03 : f32
    %55 = vector.broadcast %cst_18 : f32 to vector<4x128xf32>
    %56 = arith.mulf %1, %55 : vector<4x128xf32>
    %57 = arith.addf %54, %56 : vector<4x128xf32>
    %cst_19 = arith.constant 2.750000e-01 : f32
    %58 = vector.broadcast %cst_19 : f32 to vector<4x128xf32>
    %59 = arith.addf %57, %58 : vector<4x128xf32>
    %60 = arith.mulf %51, %59 : vector<4x128xf32>
    %61 = arith.addf %50, %60 : vector<4x128xf32>
    %62 = arith.minimumf %11, %21 : vector<4x128xf32>
    %63 = arith.addf %52, %62 : vector<4x128xf32>
    %cst_20 = arith.constant -5.000000e-02 : f32
    %64 = vector.broadcast %cst_20 : f32 to vector<4x128xf32>
    %65 = arith.mulf %0, %64 : vector<4x128xf32>
    %cst_21 = arith.constant -1.000000e-03 : f32
    %66 = vector.broadcast %cst_21 : f32 to vector<4x128xf32>
    %67 = arith.mulf %1, %66 : vector<4x128xf32>
    %68 = arith.addf %65, %67 : vector<4x128xf32>
    %cst_22 = arith.constant 4.000000e-01 : f32
    %69 = vector.broadcast %cst_22 : f32 to vector<4x128xf32>
    %70 = arith.addf %68, %69 : vector<4x128xf32>
    %71 = arith.mulf %62, %70 : vector<4x128xf32>
    %72 = arith.addf %61, %71 : vector<4x128xf32>
    %73 = arith.minimumf %11, %27 : vector<4x128xf32>
    %74 = arith.addf %63, %73 : vector<4x128xf32>
    %cst_23 = arith.constant -5.000000e-02 : f32
    %75 = vector.broadcast %cst_23 : f32 to vector<4x128xf32>
    %76 = arith.mulf %0, %75 : vector<4x128xf32>
    %cst_24 = arith.constant -1.000000e-03 : f32
    %77 = vector.broadcast %cst_24 : f32 to vector<4x128xf32>
    %78 = arith.mulf %1, %77 : vector<4x128xf32>
    %79 = arith.addf %76, %78 : vector<4x128xf32>
    %cst_25 = arith.constant 2.500000e-01 : f32
    %80 = vector.broadcast %cst_25 : f32 to vector<4x128xf32>
    %81 = arith.addf %79, %80 : vector<4x128xf32>
    %82 = arith.mulf %73, %81 : vector<4x128xf32>
    %83 = arith.addf %72, %82 : vector<4x128xf32>
    %84 = arith.minimumf %11, %33 : vector<4x128xf32>
    %85 = arith.addf %74, %84 : vector<4x128xf32>
    %cst_26 = arith.constant -0.00999999977 : f32
    %86 = vector.broadcast %cst_26 : f32 to vector<4x128xf32>
    %87 = arith.mulf %0, %86 : vector<4x128xf32>
    %cst_27 = arith.constant -2.000000e-04 : f32
    %88 = vector.broadcast %cst_27 : f32 to vector<4x128xf32>
    %89 = arith.mulf %1, %88 : vector<4x128xf32>
    %90 = arith.addf %87, %89 : vector<4x128xf32>
    %cst_28 = arith.constant 7.000000e-02 : f32
    %91 = vector.broadcast %cst_28 : f32 to vector<4x128xf32>
    %92 = arith.addf %90, %91 : vector<4x128xf32>
    %93 = arith.mulf %84, %92 : vector<4x128xf32>
    %94 = arith.addf %83, %93 : vector<4x128xf32>
    %95 = arith.minimumf %17, %21 : vector<4x128xf32>
    %96 = arith.addf %85, %95 : vector<4x128xf32>
    %cst_29 = arith.constant -5.500000e-02 : f32
    %97 = vector.broadcast %cst_29 : f32 to vector<4x128xf32>
    %98 = arith.mulf %0, %97 : vector<4x128xf32>
    %cst_30 = arith.constant 8.000000e-04 : f32
    %99 = vector.broadcast %cst_30 : f32 to vector<4x128xf32>
    %100 = arith.mulf %1, %99 : vector<4x128xf32>
    %101 = arith.addf %98, %100 : vector<4x128xf32>
    %cst_31 = arith.constant 2.225000e-01 : f32
    %102 = vector.broadcast %cst_31 : f32 to vector<4x128xf32>
    %103 = arith.addf %101, %102 : vector<4x128xf32>
    %104 = arith.mulf %95, %103 : vector<4x128xf32>
    %105 = arith.addf %94, %104 : vector<4x128xf32>
    %106 = arith.minimumf %17, %27 : vector<4x128xf32>
    %107 = arith.addf %96, %106 : vector<4x128xf32>
    %cst_32 = arith.constant -0.00999999977 : f32
    %108 = vector.broadcast %cst_32 : f32 to vector<4x128xf32>
    %109 = arith.mulf %0, %108 : vector<4x128xf32>
    %cst_33 = arith.constant -2.000000e-04 : f32
    %110 = vector.broadcast %cst_33 : f32 to vector<4x128xf32>
    %111 = arith.mulf %1, %110 : vector<4x128xf32>
    %112 = arith.addf %109, %111 : vector<4x128xf32>
    %cst_34 = arith.constant 7.000000e-02 : f32
    %113 = vector.broadcast %cst_34 : f32 to vector<4x128xf32>
    %114 = arith.addf %112, %113 : vector<4x128xf32>
    %115 = arith.mulf %106, %114 : vector<4x128xf32>
    %116 = arith.addf %105, %115 : vector<4x128xf32>
    %117 = arith.minimumf %17, %33 : vector<4x128xf32>
    %118 = arith.addf %107, %117 : vector<4x128xf32>
    %cst_35 = arith.constant 9.99999996E-13 : f32
    %119 = vector.broadcast %cst_35 : f32 to vector<4x128xf32>
    %120 = arith.addf %118, %119 : vector<4x128xf32>
    %121 = tpu.reciprocal %120 {approx = true} : vector<4x128xf32> -> vector<4x128xf32>
    %122 = arith.mulf %116, %121 : vector<4x128xf32>
    %c0_36 = arith.constant 0 : index
    %c0_37 = arith.constant 0 : index
    %123 = vector.load %arg3[%c0_36, %c0_37] : memref<4x128xi8, #tpu.memory_space<vmem>>, vector<4x128xi8>
    %124 = arith.extsi %123 : vector<4x128xi8> to vector<4x128xi32>
    %c0_i32 = arith.constant 0 : i32
    %125 = vector.broadcast %c0_i32 : i32 to vector<4x128xi32>
    %126 = arith.cmpi ne, %124, %125 : vector<4x128xi32>
    %cst_38 = arith.constant 1.000000e+00 : f32
    %127 = vector.broadcast %cst_38 : f32 to vector<4x128xf32>
    %128 = arith.select %126, %127, %122 : vector<4x128xi1>, vector<4x128xf32>
    %c0_39 = arith.constant 0 : index
    %c0_40 = arith.constant 0 : index
    %129 = vector.load %arg4[%c0_39, %c0_40] : memref<4x128xf32, #tpu.memory_space<vmem>>, vector<4x128xf32>
    tpu.vector_store %arg4[%c0_39, %c0_40], %128 {strides = array<i32>} : memref<4x128xf32, #tpu.memory_space<vmem>>, vector<4x128xf32>,
    return
  }
  func.func @transform_0(%arg0: i32) -> (i32, i32) {
    %c0_i32 = arith.constant 0 : i32
    %c0_i32_0 = arith.constant 0 : i32
    return %arg0, %c0_i32 : i32, i32
  }
  func.func @transform_1(%arg0: i32) -> (i32, i32) {
    %c0_i32 = arith.constant 0 : i32
    %c0_i32_0 = arith.constant 0 : i32
    return %arg0, %c0_i32 : i32, i32
  }
  func.func @transform_2(%arg0: i32) -> (i32, i32) {
    %c0_i32 = arith.constant 0 : i32
    %c0_i32_0 = arith.constant 0 : i32
    return %arg0, %c0_i32 : i32, i32
  }
  func.func @transform_3(%arg0: i32) -> (i32, i32) {
    %c0_i32 = arith.constant 0 : i32
    %c0_i32_0 = arith.constant 0 : i32
    return %arg0, %c0_i32 : i32, i32
  }
}

</mosaic_0001>

<bundles_post_ra>
// kernel: tpu_custom_call.1
= control target key start
LH: loop header
LB: loop body
LE: loop exit
PB: predicated region body
PF: predicated region fallthrough
CT: control target
= control target key end

     0   :  { %8 = vsyncpa [#allocation3], 0  ;;  %s288_s0 = inlined_call_operand.hbm [shape: f32[4,128], index: 0, kind: input, shape index: {}]   ;;  %s289_s1 = inlined_call_operand.hbm [shape: f32[4,128], index: 1, kind: input, shape index: {}]   ;;  %s290_s2 = inlined_call_operand.vmem [shape: s8[4,128], index: 2, kind: input, shape index: {}]   ;;  %s291_s3 = inlined_call_operand.hbm [shape: f32[4,128], index: 3, kind: output, shape index: {}]  }
   0x1   :  { %9 = vsyncpa [#allocation6], 0 }
   0x2   :  { %10 = vsyncpa [#allocation4], 0  ;;  %s232_s12 = smov [#allocation2]   ;;  %s233_s14 = smov [#allocation5]  }
   0x3   :  { %s17_s13 = sshll.u32 %s232_s12, 4  ;;  %s27_s15 = sshll.u32 %s233_s14, 4  ;;  %s18_s13 = int_to_ptr.vmem [resolvable:$true] %s17_s13  ;;  %s28_s15 = int_to_ptr.vmem [resolvable:$true] %s27_s15 }
   0x4   :  { %s174_s16 = scalar_lea.vmem %s18_s13, 64  ;;  %p179_p1 = scmp.lt.s32.totalorder %s18_s13, %s18_s13 }
   0x5   :  { %p175_p0 = scmp.ne.s32.totalorder %s18_s13, %s174_s16  ;;  %p180_p2 = scmp.lt.s32.totalorder %s174_s16, %s174_s16 }
   0x7   :  { %p181_p3 = por %p180_p2, %p179_p1 }
   0x9   :  { %p182_p4 = pnand %p181_p3, %p175_p0 }
   0xb   :  { %185 = shalt.err (!%p182_p4)
}
   0xc   :  { %20 = dma.hbm_to_vmem [thread:$0]  %s288_s0, 64, %s18_s13, [#allocation3]  }
   0xd   :  { %s194_s19 = scalar_lea.vmem %s28_s15, 64  ;;  %p199_p6 = scmp.lt.s32.totalorder %s28_s15, %s28_s15 }
   0xe   :  { %p195_p5 = scmp.ne.s32.totalorder %s28_s15, %s194_s19  ;;  %p200_p7 = scmp.lt.s32.totalorder %s194_s19, %s194_s19 }
  0x10   :  { %p201_p8 = por %p200_p7, %p199_p6 }
  0x12   :  { %p202_p9 = pnand %p201_p8, %p195_p5 }
  0x14   :  { %205 = shalt.err (!%p202_p9)
}
  0x15   :  { %30 = dma.hbm_to_vmem [thread:$0]  %s289_s1, 64, %s28_s15, [#allocation6]  }
  0x16   :  { %226 = dma.done.wait [#allocation3], 64  }
  0x17   :  { %227 = vsyncadd [#allocation3], 4294967232 }
  0x18   :  { %228 = dma.done.wait [#allocation6], 64  }
  0x19   :  { %229 = vsyncadd [#allocation6], 4294967232  ;;  %v261_v0 = vld [vmem:[#allocation2] sm:$0xf]  ;;  %v263_v1 = vld [vmem:[#allocation5] sm:$0xf] }
  0x1a   :  { %v41_v2 = vmul.f32 %v261_v0, %v261_v0  ;;  %v145_v3 = vadd.f32 -2.0, %v261_v0  ;;  %v146_v4 = vadd.f32 -4.0, %v261_v0  ;;  %v55_v5 = vmul.f32 %v263_v1, %v263_v1  ;;  %s234_s22 = smov [#allocation7]  }
  0x1b   :  { %v147_v6 = vadd.f32 -90.0, %v263_v1  ;;  %v148_v7 = vadd.f32 -180.0, %v263_v1  ;;  %v75_v24 = vmul.f32 -0.1, %v261_v0  ;;  %v76_v25 = vmul.f32 -0.002, %v263_v1 }
  0x1c   :  { %v42_v8 = vmul.f32 -0.8888889, %v41_v2  ;;  %v46_v9 = vmul.f32 %v145_v3, %v145_v3  ;;  %v56_v10 = vmul.f32 -0.00055555557, %v55_v5  ;;  %v51_v15 = vmul.f32 %v146_v4, %v146_v4  ;;  %s135_s23 = sshll.u32 %s234_s22, 4  ;;  %s136_s23 = int_to_ptr.vmem [resolvable:$true] %s135_s23 }
  0x1d   :  { %v60_v11 = vmul.f32 %v147_v6, %v147_v6  ;;  %v65_v12 = vmul.f32 %v148_v7, %v148_v7  ;;  %v83_v26 = vmul.f32 -0.05, %v261_v0  ;;  %v84_v27 = vmul.f32 -0.001, %v263_v1  ;;  %s206_s24 = scalar_lea.vmem %s136_s23, 64  ;;  %p211_p11 = scmp.lt.s32.totalorder %s136_s23, %s136_s23 }
  0x1e   :  { %v43_v13 = vmul.f32 1.442695, %v42_v8  ;;  %v47_v14 = vmul.f32 -0.8888889, %v46_v9  ;;  %v57_v16 = vmul.f32 1.442695, %v56_v10  ;;  %v77_v29 = vadd.f32 %v76_v25, %v75_v24  ;;  %p207_p10 = scmp.ne.s32.totalorder %s136_s23, %s206_s24  ;;  %p212_p12 = scmp.lt.s32.totalorder %s206_s24, %s206_s24 }
  0x1f   :  { %v61_v17 = vmul.f32 -0.00055555557, %v60_v11  ;;  %v66_v18 = vmul.f32 -0.00055555557, %v65_v12  ;;  %v52_v22 = vmul.f32 -0.8888889, %v51_v15  ;;  %v85_v32 = vadd.f32 %v84_v27, %v83_v26 }
  0x20   :  { %152 = vpow2.f32 %v43_v13  ;;  %v48_v19 = vmul.f32 1.442695, %v47_v14  ;;  %v70_v28 = vmul.f32 -0.2, %v261_v0  ;;  %v78_v36 = vadd.f32 0.7, %v77_v29  ;;  %p213_p13 = por %p212_p12, %p211_p11 }
  0x21   :  { %154 = vpow2.f32 %v57_v16  ;;  %v62_v20 = vmul.f32 1.442695, %v61_v17  ;;  %v67_v21 = vmul.f32 1.442695, %v66_v18  ;;  %v53_v23 = vmul.f32 1.442695, %v52_v22 }
  0x22   :  { %156 = vpow2.f32 %v48_v19  ;;  %v71_v35 = vadd.f32 1.0, %v70_v28  ;;  %v86_v41 = vadd.f32 0.275, %v85_v32  ;;  %v91_v49 = vadd.f32 0.4, %v85_v32  ;;  %p214_p0 = pnand %p213_p13, %p207_p10 }
  0x23   :  { %158 = vpow2.f32 %v62_v20  ;;  %v101_v50 = vmul.f32 -0.01, %v261_v0  ;;  %v102_v51 = vmul.f32 -0.0002, %v263_v1  ;;  %v96_v58 = vadd.f32 0.25, %v85_v32 }
  0x24   :  { %160 = vpow2.f32 %v67_v21  ;;  %v109_v60 = vmul.f32 -0.055, %v261_v0  ;;  %v110_v61 = vmul.f32 0.0008, %v263_v1  ;;  %v124_v18 = vld [vmem:[%s290_s2] sm:$0x1] }
  0x25   :  { %162 = vpow2.f32 %v53_v23  ;;  %v103_v59 = vadd.f32 %v102_v51, %v101_v50  ;;  %v125_v19 = vunpack.c.0.s8 %v124_v18 }
  0x26   :  { %v111_v6 = vadd.f32 %v110_v61, %v109_v60 }
  0x27   :  { %v104_v9 = vadd.f32 0.07, %v103_v59  ;;  %vm126_vm0 = vcmp.ne.s32.totalorder %v125_v19, 0 }
  0x28   :  { %v112_v14 = vadd.f32 0.2225, %v111_v6 }
  0x2d   :  { %v153_v30 = vpop.eup %152 }
  0x2e   :  { %v155_v31 = vpop.eup %154 }
  0x2f   :  { %v157_v33 = vpop.eup %156  ;;  %v69_v34 = vmin.f32 %v153_v30, %v155_v31 }
  0x30   :  { %v159_v37 = vpop.eup %158  ;;  %v89_v45 = vmin.f32 %v157_v33, %v155_v31 }
  0x31   :  { %v161_v38 = vpop.eup %160  ;;  %v73_v39 = vmin.f32 %v153_v30, %v159_v37  ;;  %v72_v42 = vmul.f32 %v71_v35, %v69_v34  ;;  %v94_v47 = vmin.f32 %v157_v33, %v159_v37 }
  0x32   :  { %v81_v40 = vmin.f32 %v153_v30, %v161_v38  ;;  %v163_v48 = vpop.eup %162  ;;  %v99_v55 = vmin.f32 %v157_v33, %v161_v38  ;;  %v92_v63 = vmul.f32 %v91_v49, %v89_v45 }
  0x33   :  { %v74_v43 = vadd.f32 %v73_v39, %v69_v34  ;;  %v79_v44 = vmul.f32 %v78_v36, %v73_v39  ;;  %v107_v57 = vmin.f32 %v163_v48, %v155_v31  ;;  %v115_v3 = vmin.f32 %v163_v48, %v159_v37 }
  0x34   :  { %v87_v53 = vmul.f32 %v86_v41, %v81_v40  ;;  %v119_v5 = vmin.f32 %v163_v48, %v161_v38  ;;  %v97_v8 = vmul.f32 %v96_v58, %v94_v47  ;;  %v105_v13 = vmul.f32 %v104_v9, %v99_v55 }
  0x35   :  { %v82_v46 = vadd.f32 %v81_v40, %v74_v43  ;;  %v80_v52 = vadd.f32 %v79_v44, %v72_v42  ;;  %v113_v16 = vmul.f32 %v112_v14, %v107_v57  ;;  %v117_v17 = vmul.f32 %v115_v3, %v104_v9 }
  0x37   :  { %v90_v54 = vadd.f32 %v89_v45, %v82_v46  ;;  %v88_v62 = vadd.f32 %v87_v53, %v80_v52 }
  0x39   :  { %v95_v56 = vadd.f32 %v94_v47, %v90_v54  ;;  %v93_v7 = vadd.f32 %v92_v63, %v88_v62 }
  0x3b   :  { %v100_v2 = vadd.f32 %v99_v55, %v95_v56  ;;  %v98_v12 = vadd.f32 %v97_v8, %v93_v7 }
  0x3d   :  { %v108_v4 = vadd.f32 %v107_v57, %v100_v2  ;;  %v106_v0 = vadd.f32 %v105_v13, %v98_v12 }
  0x3f   :  { %v116_v10 = vadd.f32 %v115_v3, %v108_v4  ;;  %v114_v1 = vadd.f32 %v113_v16, %v106_v0 }
  0x41   :  { %v120_v11 = vadd.f32 %v119_v5, %v116_v10  ;;  %v118_v20 = vadd.f32 %v117_v17, %v114_v1 }
  0x43   :  { %v121_v15 = vadd.f32 1e-12, %v120_v11 }
  0x45   :  { %164 = vrcp.f32 %v121_v15 }
  0x52   :  { %v165_v21 = vpop.eup %164 }
  0x53   :  { %v123_v22 = vmul.f32 %v165_v21, %v118_v20 }
  0x55   :  { %v127_v23 = vsel %vm126_vm0, 1.0, %v123_v22 }
  0x56   :  { %128 = vst [vmem:[#allocation7] sm:$0xf] %v127_v23 }
  0x57   :  { %217 = shalt.err (!%p214_p0)
}
  0x58   :  { %138 = dma.vmem_to_hbm [thread:$0]  %s136_s23, 64, %s291_s3, [#allocation4]  }
  0x59   :  { %230 = dma.done.wait [#allocation4], 64  }
  0x5a   :  { %231 = vsyncadd [#allocation4], 4294967232 }
  0x5b   :  { %142 = vsyncpa [#allocation3], 1 }
  0x5c   :  { %143 = vsyncpa [#allocation6], 1 }
  0x5d   :  { %144 = vsyncpa [#allocation4], 1 }

</bundles_post_ra>
